<compile_context>
chip_gen: v5e
topology: v5e:2x2
jax: 0.10.0
libtpu: 0.0.40
codegen_flags: <defaults>
</compile_context>

<pallas_src>
import functools

import numpy as np

import jax
import jax.numpy as jnp
from jax.experimental import pallas as pl
from jax.experimental.pallas import tpu as pltpu


_VMEM_LIMIT_BYTES = 48 * 1024 * 1024   # < v7x 64 MiB physical; plenty on v5e/v6e
_TARGET_BLOCK_BYTES = 2 * 1024 * 1024  # ~2 MiB of input rows per grid step
_MIN_GRID_STEPS = 4                    # megacore (v7x has 2 TCs) + pipelining


# ----------------------------- kernels ---------------------------------------
def _normalize(x_ref, a_ref, w_ref, b_ref, *, eps, precision):
    """Group-normalize a (rows, C) slab over contiguous c_out-wide lane groups."""
    x = x_ref[...].astype(jnp.float32)
    a = a_ref[...]
    # Group reductions (and broadcast back to C lanes) on the MXU.
    mean = jnp.dot(x, a, preferred_element_type=jnp.float32, precision=precision)
    mean_sq = jnp.dot(x * x, a, preferred_element_type=jnp.float32,
                      precision=precision)
    var = jnp.maximum(mean_sq - mean * mean, 0.0)
    inv = jax.lax.rsqrt(var + eps)                        # EUP
    w = w_ref[...].astype(jnp.float32)
    b = b_ref[...].astype(jnp.float32)
    return (x - mean) * (inv * w) + b


def _fused_kernel(x_ref, a_ref, w_ref, b_ref, o_ref, *, eps, scale, w_dim,
                  precision):
    """x_ref: (T*W, C)  ->  o_ref: (T, W*C) with the p1<->w rearrange folded in."""
    y = _normalize(x_ref, a_ref, w_ref, b_ref, eps=eps, precision=precision)
    y = y.astype(o_ref.dtype)
    rows, C = y.shape
    t = rows // w_dim
    cg = C // scale                      # channels per p1-slice = scale * c_out
    # Per-row rearrange (w, p1, p2, c) -> (p1, w, p2, c): for each p1 take the
    # (T*W, cg) channel slice, fold the W rows into lanes, then concatenate the
    # `scale` pieces into one lane-dense (T, W*C) slab and do a single unmasked
    # full-block store (the documented lane-dense out_spec lever).
    pieces = [y[:, p1 * cg:(p1 + 1) * cg].reshape(t, w_dim * cg)
              for p1 in range(scale)]
    o_ref[...] = jnp.concatenate(pieces, axis=-1)


def _plain_kernel(x_ref, a_ref, w_ref, b_ref, o_ref, *, eps, precision):
    """Fallback: (rows, C) -> (rows, C); rearrange done by XLA in the wrapper."""
    y = _normalize(x_ref, a_ref, w_ref, b_ref, eps=eps, precision=precision)
    o_ref[...] = y.astype(o_ref.dtype)


# ----------------------------- helpers ----------------------------------------
@functools.lru_cache(maxsize=None)
def _avg_matrix(C, scale):
    """Block-diagonal (C, C) averaging matrix: 1/c_out within each c_out group."""
    c_out = C // (scale * scale)
    gid = np.arange(C, dtype=np.int32) // c_out
    return np.ascontiguousarray(
        (gid[:, None] == gid[None, :]).astype(np.float32) / float(c_out))


def _constants(weight, bias, C, scale):
    avg = jnp.asarray(_avg_matrix(C, scale))
    w_t = jnp.tile(weight.astype(jnp.float32), scale * scale).reshape(1, C)
    b_t = jnp.tile(bias.astype(jnp.float32), scale * scale).reshape(1, C)
    return avg, w_t, b_t


def _pick_rows(n_rows, row_bytes):
    """Rows per grid step: ~2 MiB of input, >= _MIN_GRID_STEPS steps, T % 8 == 0."""
    t = max(1, _TARGET_BLOCK_BYTES // max(int(row_bytes), 1))
    t = min(t, -(-n_rows // _MIN_GRID_STEPS))
    return max(8, -(-t // 8) * 8)
    # NOTE: minimum T is 8 (sublane constraint); for absurdly wide rows
    # (W*C*itemsize > ~2 MiB) the block can exceed the 2 MiB target.


def _call(kernel_fn, x2, avg, w_t, b_t, *, grid, in_block, out_shape, out_block):
    C = avg.shape[0]
    return pl.pallas_call(
        kernel_fn,
        out_shape=out_shape,
        grid_spec=pltpu.PrefetchScalarGridSpec(
            num_scalar_prefetch=0,
            grid=grid,
            in_specs=[
                pl.BlockSpec(in_block, lambda i: (i, 0)),
                pl.BlockSpec((C, C), lambda i: (0, 0)),   # averaging matrix (resident)
                pl.BlockSpec((1, C), lambda i: (0, 0)),   # tiled weight
                pl.BlockSpec((1, C), lambda i: (0, 0)),   # tiled bias
            ],
            out_specs=pl.BlockSpec(out_block, lambda i: (i, 0)),
        ),
        compiler_params=pltpu.CompilerParams(
            dimension_semantics=("parallel",),
            vmem_limit_bytes=_VMEM_LIMIT_BYTES,
        ),
    )(x2, avg, w_t, b_t)


# ----------------------------- forward paths ----------------------------------
def _forward_fused(x, H, W, weight, bias, *, scale, eps, precision):
    """Single HBM read + write: rearrange folded into the kernel's store."""
    B, L, C = x.shape
    s = scale
    c_out = C // (s * s)
    BH = B * H
    avg, w_t, b_t = _constants(weight, bias, C, s)

    T = _pick_rows(BH, W * C * x.dtype.itemsize)
    BH_pad = -(-BH // T) * T
    x2 = x.reshape(BH * W, C)
    if BH_pad != BH:
        x2 = jnp.pad(x2, ((0, (BH_pad - BH) * W), (0, 0)))

    out2 = _call(
        functools.partial(_fused_kernel, eps=eps, scale=s, w_dim=W,
                          precision=precision),
        x2, avg, w_t, b_t,
        grid=(BH_pad // T,),
        in_block=(T * W, C),
        out_shape=jax.ShapeDtypeStruct((BH_pad, W * C), x.dtype),
        out_block=(T, W * C),
    )
    if BH_pad != BH:
        out2 = out2[:BH]
    # (B*H, W*C) with per-row layout (p1, w, p2, c) is exactly the rearranged
    # output's row-major memory layout, so this final reshape is layout-trivial.
    return out2.reshape(B, H * s * W * s, c_out)


def _forward_unfused(x, H, W, weight, bias, *, scale, eps, precision):
    """Fallback: lane-dense group-norm kernel + XLA reshape/transpose rearrange."""
    B, L, C = x.shape
    s = scale
    c_out = C // (s * s)
    avg, w_t, b_t = _constants(weight, bias, C, s)

    R = B * H * W
    TR = _pick_rows(R, C * x.dtype.itemsize)
    R_pad = -(-R // TR) * TR
    x2 = x.reshape(R, C)
    if R_pad != R:
        x2 = jnp.pad(x2, ((0, R_pad - R), (0, 0)))

    y = _call(
        functools.partial(_plain_kernel, eps=eps, precision=precision),
        x2, avg, w_t, b_t,
        grid=(R_pad // TR,),
        in_block=(TR, C),
        out_shape=jax.ShapeDtypeStruct((R_pad, C), x.dtype),
        out_block=(TR, C),
    )
    if R_pad != R:
        y = y[:R]
    y = y.reshape(B, H, W, s, s, c_out)
    y = jnp.transpose(y, (0, 1, 3, 2, 4, 5))   # extra HBM pass (fallback only)
    return y.reshape(B, H * s * W * s, c_out)


# ----------------------------- public entry point ------------------------------
_CANDIDATES = (
    (True, jax.lax.Precision.HIGH),      # fused rearrange, 3-pass matmuls (fastest)
    (True, jax.lax.Precision.HIGHEST),   # fused rearrange, 6-pass matmuls
    (False, jax.lax.Precision.HIGHEST),  # plain kernel + XLA rearrange
)
_IMPL_CACHE = {}


def patch_expand_xx_forward(x, H, W, weight, bias, *, scale=4, eps=1e-5):
    """Equivalent of PatchExpand_XX.forward.  x: (B, H*W, C)."""
    B, L, C = x.shape
    assert L == H * W, "input feature has wrong size"
    assert C % (scale * scale) == 0, "dim must be divisible by dim_scale**2"
    # TODO(synk): for very large C (>512) replace the (C,C) block-diag matmul
    # with a log2(c_out)-step pltpu.roll+add lane reduce to stay off the MXU
    # roofline (MXU work per element scales with C in the matmul formulation).

    def run(fused, precision):
        fn = _forward_fused if fused else _forward_unfused
        return fn(x, H, W, weight, bias, scale=scale, eps=eps,
                  precision=precision)

    key = (tuple(x.shape), str(x.dtype), H, W, scale)
    if key in _IMPL_CACHE:
        return run(*_IMPL_CACHE[key])

    # One-time probe per signature: pick the fastest config that Mosaic can
    # lower on this chip / shape.  (Under jit tracing no error is raised, so
    # candidate 0 is used -- which is the intended fast path anyway.)
    last_err = None
    for cand in _CANDIDATES:
        try:
            out = run(*cand)
            out = jax.block_until_ready(out)   # surface lowering/runtime errors
            _IMPL_CACHE[key] = cand
            return out
        except Exception as err:  # noqa: BLE001 - probing Mosaic lowering support
            last_err = err
    raise last_err


# ----------------------------- reference (pure JAX) ----------------------------
def _reference(x, H, W, weight, bias, *, scale=4, eps=1e-5):
    B, L, C = x.shape
    c_out = C // (scale * scale)
    xr = x.reshape(B, H, W, scale, scale, c_out)
    xr = jnp.transpose(xr, (0, 1, 3, 2, 4, 5)).reshape(B, -1, c_out)
    xf = xr.astype(jnp.float32)
    mean = jnp.mean(xf, axis=-1, keepdims=True)
    var = jnp.mean((xf - mean) ** 2, axis=-1, keepdims=True)
    y = (xf - mean) * jax.lax.rsqrt(var + eps) * weight + bias
    return y.astype(x.dtype)


if __name__ == "__main__":
    key = jax.random.PRNGKey(0)
    k_x, k_w, k_b = jax.random.split(key, 3)

    B = 2
    dim = 128                  # C
    scale = 4                  # dim_scale
    c_out = dim // scale ** 2  # LayerNorm normalized dim = 8

    weight = 1.0 + 0.1 * jax.random.normal(k_w, (c_out,), dtype=jnp.float32)
    bias = 0.1 * jax.random.normal(k_b, (c_out,), dtype=jnp.float32)

    # Case 1: W % 8 == 0, multi-step grid (exercises megacore sharding).
    H = W = 8
    x = jax.random.normal(k_x, (B, H * W, dim), dtype=jnp.float32)
    out = jax.block_until_ready(
        patch_expand_xx_forward(x, H, W, weight, bias, scale=scale))
    ref = _reference(x, H, W, weight, bias, scale=scale)
    assert out.shape == (B, H * scale * W * scale, c_out), out.shape
    err = jnp.max(jnp.abs(out - ref))
    assert jnp.allclose(out, ref, atol=2e-4, rtol=2e-4), f"case1 max err {err}"

    # Case 2: W % 8 != 0 (previously forced a separate XLA transpose pass).
    H2 = W2 = 4
    x_small = jax.random.normal(k_x, (B, H2 * W2, dim), dtype=jnp.float32)
    out2 = jax.block_until_ready(
        patch_expand_xx_forward(x_small, H2, W2, weight, bias, scale=scale))
    ref2 = _reference(x_small, H2, W2, weight, bias, scale=scale)
    assert out2.shape == (B, H2 * scale * W2 * scale, c_out), out2.shape
    err2 = jnp.max(jnp.abs(out2 - ref2))
    assert jnp.allclose(out2, ref2, atol=2e-4, rtol=2e-4), f"case2 max err {err2}"

    print("KERNEL_OK")
</pallas_src>

<mosaic_0001>
module attributes {stable_mosaic.version = 11 : i64} {
  func.func @_fused_kernel(%arg0: i32, %arg1: memref<64x128xf32, #tpu.memory_space<vmem>>, %arg2: memref<128x128xf32, #tpu.memory_space<vmem>>, %arg3: memref<1x128xf32, #tpu.memory_space<vmem>>, %arg4: memref<1x128xf32, #tpu.memory_space<vmem>>, %arg5: memref<8x1024xf32, #tpu.memory_space<vmem>>) attributes {dimension_semantics = [#tpu.dimension_semantics<parallel>], iteration_bounds = array<i64: 2>, scalar_prefetch = 0 : i64, scratch_operands = 0 : i64, tpu.core_type = #tpu.core_type<tc>, window_params = [{transform_indices = @transform_0, window_bounds = array<i64: 64, 128>}, {pipeline_mode = #tpu.pipeline_mode<synchronous>, transform_indices = @transform_1, window_bounds = array<i64: 128, 128>}, {pipeline_mode = #tpu.pipeline_mode<synchronous>, transform_indices = @transform_2, window_bounds = array<i64: 1, 128>}, {pipeline_mode = #tpu.pipeline_mode<synchronous>, transform_indices = @transform_3, window_bounds = array<i64: 1, 128>}, {transform_indices = @transform_4, window_bounds = array<i64: 8, 1024>}]} {
    %c0 = arith.constant 0 : index
    %c0_0 = arith.constant 0 : index
    %0 = vector.load %arg1[%c0, %c0_0] : memref<64x128xf32, #tpu.memory_space<vmem>>, vector<64x128xf32>
    %c0_1 = arith.constant 0 : index
    %c0_2 = arith.constant 0 : index
    %1 = vector.load %arg2[%c0_1, %c0_2] : memref<128x128xf32, #tpu.memory_space<vmem>>, vector<128x128xf32>
    %cst = arith.constant dense<0.000000e+00> : vector<64x128xf32>
    %2 = tpu.matmul %0, %1, %cst {dimension_numbers = #tpu.dot_dimension_numbers<[1], [0], [0], [1], [0, 0, 1, 1], [], []>, precision = #tpu.contract_precision<fp32>} : vector<64x128xf32>, vector<128x128xf32>, vector<64x128xf32> -> vector<64x128xf32>
    %3 = arith.mulf %0, %0 : vector<64x128xf32>
    %cst_3 = arith.constant dense<0.000000e+00> : vector<64x128xf32>
    %4 = tpu.matmul %3, %1, %cst_3 {dimension_numbers = #tpu.dot_dimension_numbers<[1], [0], [0], [1], [0, 0, 1, 1], [], []>, precision = #tpu.contract_precision<fp32>} : vector<64x128xf32>, vector<128x128xf32>, vector<64x128xf32> -> vector<64x128xf32>
    %5 = arith.mulf %2, %2 : vector<64x128xf32>
    %6 = arith.subf %4, %5 : vector<64x128xf32>
    %cst_4 = arith.constant 0.000000e+00 : f32
    %7 = vector.broadcast %cst_4 : f32 to vector<64x128xf32>
    %8 = arith.maximumf %6, %7 : vector<64x128xf32>
    %cst_5 = arith.constant 9.99999974E-6 : f32
    %9 = vector.broadcast %cst_5 : f32 to vector<64x128xf32>
    %10 = arith.addf %8, %9 : vector<64x128xf32>
    %11 = math.rsqrt %10 : vector<64x128xf32>
    %c0_6 = arith.constant 0 : index
    %c0_7 = arith.constant 0 : index
    %12 = vector.load %arg3[%c0_6, %c0_7] : memref<1x128xf32, #tpu.memory_space<vmem>>, vector<1x128xf32>
    %c0_8 = arith.constant 0 : index
    %c0_9 = arith.constant 0 : index
    %13 = vector.load %arg4[%c0_8, %c0_9] : memref<1x128xf32, #tpu.memory_space<vmem>>, vector<1x128xf32>
    %14 = arith.subf %0, %2 : vector<64x128xf32>
    %15 = vector.broadcast %12 : vector<1x128xf32> to vector<64x128xf32>
    %16 = arith.mulf %11, %15 : vector<64x128xf32>
    %17 = arith.mulf %14, %16 : vector<64x128xf32>
    %18 = vector.broadcast %13 : vector<1x128xf32> to vector<64x128xf32>
    %19 = arith.addf %17, %18 : vector<64x128xf32>
    %20 = vector.extract_strided_slice %19 {offsets = [0, 0], sizes = [64, 32], strides = [1, 1]} : vector<64x128xf32> to vector<64x32xf32>
    %21 = vector.shape_cast %20 : vector<64x32xf32> to vector<8x256xf32>
    %22 = vector.extract_strided_slice %19 {offsets = [0, 32], sizes = [64, 32], strides = [1, 1]} : vector<64x128xf32> to vector<64x32xf32>
    %23 = vector.shape_cast %22 : vector<64x32xf32> to vector<8x256xf32>
    %24 = vector.extract_strided_slice %19 {offsets = [0, 64], sizes = [64, 32], strides = [1, 1]} : vector<64x128xf32> to vector<64x32xf32>
    %25 = vector.shape_cast %24 : vector<64x32xf32> to vector<8x256xf32>
    %26 = vector.extract_strided_slice %19 {offsets = [0, 96], sizes = [64, 32], strides = [1, 1]} : vector<64x128xf32> to vector<64x32xf32>
    %27 = vector.shape_cast %26 : vector<64x32xf32> to vector<8x256xf32>
    %28 = tpu.concatenate %21, %23, %25, %27 in 1 : vector<8x256xf32>, vector<8x256xf32>, vector<8x256xf32>, vector<8x256xf32> -> vector<8x1024xf32>
    %c0_10 = arith.constant 0 : index
    %c0_11 = arith.constant 0 : index
    %29 = vector.load %arg5[%c0_10, %c0_11] : memref<8x1024xf32, #tpu.memory_space<vmem>>, vector<8x1024xf32>
    tpu.vector_store %arg5[%c0_10, %c0_11], %28 {strides = array<i32>} : memref<8x1024xf32, #tpu.memory_space<vmem>>, vector<8x1024xf32>,
    return
  }
  func.func @transform_0(%arg0: i32) -> (i32, i32) {
    %c0_i32 = arith.constant 0 : i32
    %c0_i32_0 = arith.constant 0 : i32
    return %arg0, %c0_i32 : i32, i32
  }
  func.func @transform_1(%arg0: i32) -> (i32, i32) {
    %c0_i32 = arith.constant 0 : i32
    %c0_i32_0 = arith.constant 0 : i32
    %c0_i32_1 = arith.constant 0 : i32
    return %c0_i32, %c0_i32_0 : i32, i32
  }
  func.func @transform_2(%arg0: i32) -> (i32, i32) {
    %c0_i32 = arith.constant 0 : i32
    %c0_i32_0 = arith.constant 0 : i32
    %c0_i32_1 = arith.constant 0 : i32
    return %c0_i32, %c0_i32_0 : i32, i32
  }
  func.func @transform_3(%arg0: i32) -> (i32, i32) {
    %c0_i32 = arith.constant 0 : i32
    %c0_i32_0 = arith.constant 0 : i32
    %c0_i32_1 = arith.constant 0 : i32
    return %c0_i32, %c0_i32_0 : i32, i32
  }
  func.func @transform_4(%arg0: i32) -> (i32, i32) {
    %c0_i32 = arith.constant 0 : i32
    %c0_i32_0 = arith.constant 0 : i32
    return %arg0, %c0_i32 : i32, i32
  }
}

module attributes {stable_mosaic.version = 11 : i64} {
  func.func @_plain_kernel(%arg0: i32, %arg1: memref<32x128xf32, #tpu.memory_space<vmem>>, %arg2: memref<128x128xf32, #tpu.memory_space<vmem>>, %arg3: memref<1x128xf32, #tpu.memory_space<vmem>>, %arg4: memref<1x128xf32, #tpu.memory_space<vmem>>, %arg5: memref<32x128xf32, #tpu.memory_space<vmem>>) attributes {dimension_semantics = [#tpu.dimension_semantics<parallel>], iteration_bounds = array<i64: 4>, scalar_prefetch = 0 : i64, scratch_operands = 0 : i64, tpu.core_type = #tpu.core_type<tc>, window_params = [{transform_indices = @transform_0, window_bounds = array<i64: 32, 128>}, {pipeline_mode = #tpu.pipeline_mode<synchronous>, transform_indices = @transform_1, window_bounds = array<i64: 128, 128>}, {pipeline_mode = #tpu.pipeline_mode<synchronous>, transform_indices = @transform_2, window_bounds = array<i64: 1, 128>}, {pipeline_mode = #tpu.pipeline_mode<synchronous>, transform_indices = @transform_3, window_bounds = array<i64: 1, 128>}, {transform_indices = @transform_4, window_bounds = array<i64: 32, 128>}]} {
    %c0 = arith.constant 0 : index
    %c0_0 = arith.constant 0 : index
    %0 = vector.load %arg1[%c0, %c0_0] : memref<32x128xf32, #tpu.memory_space<vmem>>, vector<32x128xf32>
    %c0_1 = arith.constant 0 : index
    %c0_2 = arith.constant 0 : index
    %1 = vector.load %arg2[%c0_1, %c0_2] : memref<128x128xf32, #tpu.memory_space<vmem>>, vector<128x128xf32>
    %cst = arith.constant dense<0.000000e+00> : vector<32x128xf32>
    %2 = tpu.matmul %0, %1, %cst {dimension_numbers = #tpu.dot_dimension_numbers<[1], [0], [0], [1], [0, 0, 1, 1], [], []>, precision = #tpu.contract_precision<fp32>} : vector<32x128xf32>, vector<128x128xf32>, vector<32x128xf32> -> vector<32x128xf32>
    %3 = arith.mulf %0, %0 : vector<32x128xf32>
    %cst_3 = arith.constant dense<0.000000e+00> : vector<32x128xf32>
    %4 = tpu.matmul %3, %1, %cst_3 {dimension_numbers = #tpu.dot_dimension_numbers<[1], [0], [0], [1], [0, 0, 1, 1], [], []>, precision = #tpu.contract_precision<fp32>} : vector<32x128xf32>, vector<128x128xf32>, vector<32x128xf32> -> vector<32x128xf32>
    %5 = arith.mulf %2, %2 : vector<32x128xf32>
    %6 = arith.subf %4, %5 : vector<32x128xf32>
    %cst_4 = arith.constant 0.000000e+00 : f32
    %7 = vector.broadcast %cst_4 : f32 to vector<32x128xf32>
    %8 = arith.maximumf %6, %7 : vector<32x128xf32>
    %cst_5 = arith.constant 9.99999974E-6 : f32
    %9 = vector.broadcast %cst_5 : f32 to vector<32x128xf32>
    %10 = arith.addf %8, %9 : vector<32x128xf32>
    %11 = math.rsqrt %10 : vector<32x128xf32>
    %c0_6 = arith.constant 0 : index
    %c0_7 = arith.constant 0 : index
    %12 = vector.load %arg3[%c0_6, %c0_7] : memref<1x128xf32, #tpu.memory_space<vmem>>, vector<1x128xf32>
    %c0_8 = arith.constant 0 : index
    %c0_9 = arith.constant 0 : index
    %13 = vector.load %arg4[%c0_8, %c0_9] : memref<1x128xf32, #tpu.memory_space<vmem>>, vector<1x128xf32>
    %14 = arith.subf %0, %2 : vector<32x128xf32>
    %15 = vector.broadcast %12 : vector<1x128xf32> to vector<32x128xf32>
    %16 = arith.mulf %11, %15 : vector<32x128xf32>
    %17 = arith.mulf %14, %16 : vector<32x128xf32>
    %18 = vector.broadcast %13 : vector<1x128xf32> to vector<32x128xf32>
    %19 = arith.addf %17, %18 : vector<32x128xf32>
    %c0_10 = arith.constant 0 : index
    %c0_11 = arith.constant 0 : index
    %20 = vector.load %arg5[%c0_10, %c0_11] : memref<32x128xf32, #tpu.memory_space<vmem>>, vector<32x128xf32>
    tpu.vector_store %arg5[%c0_10, %c0_11], %19 {strides = array<i32>} : memref<32x128xf32, #tpu.memory_space<vmem>>, vector<32x128xf32>,
    return
  }
  func.func @transform_0(%arg0: i32) -> (i32, i32) {
    %c0_i32 = arith.constant 0 : i32
    %c0_i32_0 = arith.constant 0 : i32
    return %arg0, %c0_i32 : i32, i32
  }
  func.func @transform_1(%arg0: i32) -> (i32, i32) {
    %c0_i32 = arith.constant 0 : i32
    %c0_i32_0 = arith.constant 0 : i32
    %c0_i32_1 = arith.constant 0 : i32
    return %c0_i32, %c0_i32_0 : i32, i32
  }
  func.func @transform_2(%arg0: i32) -> (i32, i32) {
    %c0_i32 = arith.constant 0 : i32
    %c0_i32_0 = arith.constant 0 : i32
    %c0_i32_1 = arith.constant 0 : i32
    return %c0_i32, %c0_i32_0 : i32, i32
  }
  func.func @transform_3(%arg0: i32) -> (i32, i32) {
    %c0_i32 = arith.constant 0 : i32
    %c0_i32_0 = arith.constant 0 : i32
    %c0_i32_1 = arith.constant 0 : i32
    return %c0_i32, %c0_i32_0 : i32, i32
  }
  func.func @transform_4(%arg0: i32) -> (i32, i32) {
    %c0_i32 = arith.constant 0 : i32
    %c0_i32_0 = arith.constant 0 : i32
    return %arg0, %c0_i32 : i32, i32
  }
}

</mosaic_0001>

<bundles_post_ra>
// kernel: tpu_custom_call.1
= control target key start
LH: loop header
LB: loop body
LE: loop exit
PB: predicated region body
PF: predicated region fallthrough
CT: control target
= control target key end

     0   :  { %9 = vsyncpa [#allocation3], 0  ;;  %s2265_s0 = inlined_call_operand.hbm [shape: f32[128,128], index: 0, kind: input, shape index: {}]   ;;  %s2266_s1 = inlined_call_operand.hbm [shape: f32[128,128], index: 1, kind: input, shape index: {}]   ;;  %s2267_s2 = inlined_call_operand.vmem [shape: f32[1,128], index: 2, kind: input, shape index: {}]   ;;  %s2268_s3 = inlined_call_operand.vmem [shape: f32[1,128], index: 3, kind: input, shape index: {}]   ;;  %s2269_s4 = inlined_call_operand.hbm [shape: f32[128,128], index: 4, kind: output, shape index: {}]  }
   0x1   :  { %11 = vsyncpa [#allocation3 + $0x1], 0 }
   0x2   :  { %12 = vsyncpa [#allocation6], 0 }
   0x3   :  { %13 = vsyncpa [#allocation4], 0 }
   0x4   :  { %15 = vsyncpa [#allocation4 + $0x1], 0  ;;  %s1563_s15 = smov 0   ;;  %s1565_s16 = smov 0  }
   0x5   :  { %s1567_s17 = smov 0   ;;  %s1569_s18 = smov 0  }
   0x6 LB: > { %s1584_s19 = sadd.s32 4294967295, %s1531_s18   ;;  %s1312_s20 = sadd.s32 4294967294, %s1531_s18   ;;  %s1531_s18 = sphi %s1569_s18, %s2323_s18   ;;  %s1527_s17 = sphi %s1567_s17, %s2322_s17   ;;  %s1523_s16 = sphi %s1565_s16, %s2321_s16   ;;  %s1519_s15 = sphi %s1563_s15, %s2320_s15  }
   0x7   : > { %p41_p0 = scmp.ne.s32.totalorder %s1523_s16, %s1519_s15  ;;  %p42_p1 = scmp.eq.s32.totalorder %s1584_s19, 0 }
   0x8   : > { %p128_p2 = scmp.eq.s32.totalorder %s1584_s19, 3  ;;  %p134_p3 = scmp.eq.s32.totalorder %s1312_s20, 3 }
   0x9   : > { %p1593_p4 = por %p42_p1, %p41_p0  ;;  %p1313_p5 = scmp.ge.s32.totalorder %s1531_s18, 1 }
   0xa   : > { %p1598_p6 = por %p134_p3, %p41_p0  ;;  %p141_p7 = scmp.lt.s32.totalorder %s1531_s18, 5 }
   0xb   : > { %s152_s25 = sshll.u32 %s2266_s1, 4  ;;  %s1533_s27 = smov [#allocation5]   ;;  %s153_s25 = int_to_ptr.hbm [resolvable:$true] %s152_s25 }
   0xc   : > { %p1606_p8 = pnand %p1313_p5, %p141_p7  ;;  %s154_s28 = sshll.u32 %s1533_s27, 4  ;;  %s155_s28 = int_to_ptr.vmem [resolvable:$true] %s154_s28 }
   0xd   : > { %s1615_s29 = sadd.s32 1, %s1531_s18   ;;  %s1534_s30 = smov 128  }
   0xe   : > { %p1338_p9 = pneg %p1606_p8  ;;  %s1535_s5 = smov 8  }
   0xf   : > { %s25_s6 = ssub.s32 %s1531_s18, %s1615_s29  ;;  %s28_s7 = sadd.s32 1, %s1527_s17 }
  0x10   : > { %p1339_p10 = pnand %p1338_p9, %p42_p1  ;;  %p26_p11 = scmp.eq.s32.totalorder %s25_s6, 0 }
  0x11   : > { %p35_p12 = scmp.ne.s32.totalorder %s1527_s17, %s1523_s16  ;;  %p36_p13 = scmp.eq.s32.totalorder %s1531_s18, 0 }
  0x12   : > { %1341 = dma.hbm_to_vmem [thread:$0]  (!%p1339_p10), %s153_s25, 2048, %s155_s28, [#allocation6], %s1534_s30, %s1534_s30, %s1535_s5  }
  0x13   : > { %s1627_s8 = scalar_select %p26_p11, %s1527_s17, %s28_s7  }
  0x14   : > { %p1631_p0 = por %p128_p2, %p35_p12  ;;  %p1351_p3 = scmp.lt.s32.totalorder %s1531_s18, 4 }
  0x15   : > { %s174_s10 = sand.u32 1, %s1527_s17   ;;  %s1328_s11 = sshll.u32 %s1531_s18, 5 }
  0x16   : > { %p37_p5 = por %p36_p13, %p35_p12  ;;  %s1316_s12 = sshll.u32 %s174_s10, 5 }
  0x17   : > { %s183_s20 = scalar_lea.hbm %s2265_s0, %s1328_s11  ;;  %s178_s24 = scalar_lea.vmem [#allocation2], %s1316_s12 }
  0x18   : > { %s184_s23 = sshll.u32 %s183_s20, 4  ;;  %s186_s25 = sshll.u32 %s178_s24, 4  ;;  %s185_s23 = int_to_ptr.hbm [resolvable:$true] %s184_s23  ;;  %s187_s25 = int_to_ptr.vmem [resolvable:$true] %s186_s25 }
  0x19   : > { %p1641_p7 = pnand %p1351_p3, %p37_p5  ;;  %s175_s28 = scalar_lea.sflag [#allocation3], %s174_s10 }
  0x1a   : > { %s1431_s6 = sshra.s32 %s185_s23, 4  ;;  %s1438_s12 = scalar_lea.hbm %s2265_s0, 128  ;;  %s1432_s6 = int_to_ptr.hbm [resolvable:$true] %s1431_s6 }
  0x1b   : > { %s1433_s7 = scalar_lea.hbm %s1432_s6, 32  ;;  %p1435_p9 = pneg %p1641_p7 }
  0x1c   : > { %p1434_p2 = scmp.ne.s32.totalorder %s1432_s6, %s1433_s7  ;;  %p1439_p12 = scmp.lt.s32.totalorder %s1432_s6, %s2265_s0 }
  0x1d   : > { %p1440_p13 = scmp.lt.s32.totalorder %s1438_s12, %s1433_s7 }
  0x1e   : > { %p1436_p10 = pnand %p1435_p9, %p1434_p2 }
  0x1f   : > { %p1441_p3 = por %p1440_p13, %p1439_p12 }
  0x20   : > { %p1437_p11 = pneg %p1436_p10 }
  0x22   : > { %p1442_p5 = pnand %p1441_p3, %p1437_p11 }
  0x24   : > { %1445 = shalt.err (!%p1442_p5)
}
  0x25   : > { %1345 = dma.hbm_to_vmem [thread:$0]  (!%p1641_p7), %s185_s23, 512, %s187_s25, %s175_s28, %s1534_s30, %s1534_s30, %s1535_s5  }
  0x26   : > { %198 = sbr.rel (%p1606_p8) target bundleno = 360 (0x168), region = 36 }
  0x2b   : > { %s1661_s10 = sand.u32 1, %s1523_s16  }
  0x2c   : > { %s1320_s24 = sshll.u32 %s1661_s10, 5  ;;  %s201_s6 = scalar_lea.sflag [#allocation3], %s1661_s10 }
  0x2d   : > { %s1667_s7 = scalar_lea.vmem [#allocation2], %s1320_s24 }
  0x2e   : > { %1506 = dma.done.wait (%p1593_p4), %s201_s6, 512  }
  0x2f   : > { %1508 = vsyncadd (%p1593_p4), %s201_s6, 4294966784 }
  0x30   : > { %1510 = dma.done.wait (%p42_p1), [#allocation6], 2048  }
  0x31   : > { %1512 = vsyncadd (%p42_p1), [#allocation6], 4294965248  ;;  %v256_v0 = vld [vmem:[#allocation5 + $0x78] sm:$0xff]  ;;  %v255_v1 = vld [vmem:[#allocation5 + $0x70] sm:$0xff]  ;;  %s2217_s23 = scalar_lea.vmem [#allocation7], %s1320_s24  ;;  %s1329_s25 = sshll.u32 %s1584_s19, 5 }
  0x32   : > { %v254_v2 = vld [vmem:[#allocation5 + $0x68] sm:$0xff]  ;;  %v1677_v3 = vand.u32 4294901760, %v256_v0  ;;  %v1679_v4 = vand.u32 4294901760, %v255_v1  ;;  %v253_v6 = vld [vmem:[#allocation5 + $0x60] sm:$0xff]  ;;  %v252_v7 = vld [vmem:[#allocation5 + $0x58] sm:$0xff]  ;;  %s1225_s11 = scalar_lea.hbm %s2269_s4, %s1329_s25  ;;  %s1226_s19 = sshll.u32 %s2217_s23, 4  ;;  %s1227_s19 = int_to_ptr.vmem [resolvable:$true] %s1226_s19 }
  0x33   : > { %v1681_v5 = vand.u32 4294901760, %v254_v2  ;;  %v251_v8 = vld [vmem:[#allocation5 + $0x50] sm:$0xff]  ;;  %v1683_v9 = vand.u32 4294901760, %v253_v6  ;;  %v1685_v10 = vand.u32 4294901760, %v252_v7  ;;  %v250_v12 = vld [vmem:[#allocation5 + $0x48] sm:$0xff]  ;;  %v249_v13 = vld [vmem:[#allocation5 + $0x40] sm:$0xff] }
  0x34   : > { %v1687_v11 = vand.u32 4294901760, %v251_v8  ;;  %258 = vmatpush.msra.mxu0 %v1677_v3  ;;  %v1691_v14 = vsub.f32 %v256_v0, %v1677_v3  ;;  %505 = vmatpush.msra.mxu3 %v1677_v3  ;;  %v1695_v15 = vsub.f32 %v255_v1, %v1679_v4  ;;  %v1700_v17 = vand.u32 4294901760, %v250_v12  ;;  %v248_v18 = vld [vmem:[#allocation5 + $0x38] sm:$0xff]  ;;  %v247_v29 = vld [vmem:[#allocation5 + $0x30] sm:$0xff]  ;;  %v246_v36 = vld [vmem:[#allocation5 + $0x28] sm:$0xff]  ;;  %s1228_s13 = sshll.u32 %s1225_s11, 4  ;;  %s1229_s13 = int_to_ptr.hbm [resolvable:$true] %s1228_s13 }
  0x35   : > { %v1698_v16 = vsub.f32 %v254_v2, %v1681_v5  ;;  %v1703_v19 = vsub.f32 %v253_v6, %v1683_v9  ;;  %v1706_v20 = vsub.f32 %v252_v7, %v1685_v10  ;;  %v1708_v21 = vand.u32 4294901760, %v249_v13  ;;  %v245_v43 = vld [vmem:[#allocation5 + $0x20] sm:$0xff]  ;;  %v244_v49 = vld [vmem:[#allocation5 + $0x18] sm:$0xff]  ;;  %v243_v55 = vld [vmem:[#allocation5 + $0x10] sm:$0xff]  ;;  %s1214_s12 = scalar_lea.sflag [#allocation4], %s1661_s10  ;;  %s1475_s14 = sshra.s32 %s1229_s13, 4  ;;  %s1476_s14 = int_to_ptr.hbm [resolvable:$true] %s1475_s14 }
  0x36   : > { %2290 = vst [vmem:[#allocation11_spill] sm:$0xff] %v1691_v14  ;;  %v1711_v22 = vsub.f32 %v251_v8, %v1687_v11  ;;  %260 = vmatpush.msra.mxu0 %v1679_v4  ;;  %437 = vmatpush.msra.mxu2 %v1691_v14  ;;  %v1716_v23 = vand.u32 4294901760, %v1691_v14  ;;  %v1719_v24 = vand.u32 4294901760, %v1695_v15  ;;  %v1728_v27 = vand.u32 4294901760, %v248_v18  ;;  %v1800_v56 = vld [vmem:[%s1667_s7] sm:$0xff]  ;;  %v242_v62 = vld [vmem:[#allocation5 + $0x8] sm:$0xff]  ;;  %p1482_p7 = scmp.lt.s32.totalorder %s1476_s14, %s2269_s4 }
  0x37   : > { %2291 = vst [vmem:[#allocation12_spill] sm:$0xff] %v1695_v15  ;;  %v1722_v25 = vand.u32 4294901760, %v1698_v16  ;;  %507 = vmatpush.msra.mxu3 %v1679_v4  ;;  %v1726_v26 = vand.u32 4294901760, %v1703_v19  ;;  %v1731_v28 = vsub.f32 %v250_v12, %v1700_v17  ;;  %v1742_v33 = vand.u32 4294901760, %v1706_v20  ;;  %v241_v8 = vld [vmem:[#allocation5] sm:$0xff]  ;;  %s1477_s20 = scalar_lea.hbm %s1476_s14, 32 }
  0x38   : > { %2292 = vst [vmem:[#allocation13_spill] sm:$0xff] %v1698_v16  ;;  %262 = vmatpush.msra.mxu0 %v1681_v5  ;;  %440 = vmatpush.msra.mxu2 %v1695_v15  ;;  %v325_v30 = vsub.f32 %v1691_v14, %v1716_v23  ;;  %v331_v31 = vsub.f32 %v1695_v15, %v1719_v24  ;;  %v1746_v34 = vand.u32 4294901760, %v1711_v22  ;;  %v1759_v40 = vand.u32 4294901760, %v247_v29  ;;  %p1478_p1 = scmp.ne.s32.totalorder %s1476_s14, %s1477_s20 }
  0x39   : > { %2293 = vst [vmem:[#allocation14_spill] sm:$0xff] %v1703_v19  ;;  %v337_v32 = vsub.f32 %v1698_v16, %v1722_v25  ;;  %509 = vmatpush.msra.mxu3 %v1681_v5  ;;  %v1749_v35 = vsub.f32 %v249_v13, %v1708_v21  ;;  %v343_v39 = vsub.f32 %v1703_v19, %v1726_v26  ;;  %v1763_v41 = vand.u32 4294901760, %v1731_v28 }
  0x3a   : > { %2294 = vst [vmem:[#allocation15_spill] sm:$0xff] %v1706_v20  ;;  %264 = vmatpush.msra.mxu0 %v1683_v9  ;;  %v1752_v37 = vand.u32 4294901760, %v325_v30  ;;  %443 = vmatpush.msra.mxu2 %v1698_v16  ;;  %v1755_v38 = vand.u32 4294901760, %v331_v31  ;;  %v1766_v42 = vsub.f32 %v248_v18, %v1728_v27  ;;  %v349_v45 = vsub.f32 %v1706_v20, %v1742_v33  ;;  %v1855_v31 = vld [vmem:[%s1667_s7 + $0x8] sm:$0xff]  ;;  %p1479_p4 = pnand %p1478_p1, %p1631_p0 }
  0x3b   : > { %2295 = vst [vmem:[#allocation16_spill] sm:$0xff] %v1711_v22  ;;  %511 = vmatpush.msra.mxu3 %v1683_v9  ;;  %v1770_v44 = vand.u32 4294901760, %v337_v32  ;;  %v1774_v46 = vand.u32 4294901760, %v246_v36  ;;  %v355_v47 = vsub.f32 %v1711_v22, %v1746_v34  ;;  %v1781_v48 = vand.u32 4294901760, %v1749_v35 }
  0x3c   : > { %2296 = vst [vmem:[#allocation17_spill] sm:$0xff] %v1731_v28  ;;  %266 = vmatpush.msra.mxu0 %v1685_v10  ;;  %327 = vmatpush.msra.mxu1 %v1752_v37  ;;  %v1785_v50 = vand.u32 4294901760, %v343_v39  ;;  %v1787_v51 = vand.u32 4294901760, %v245_v43  ;;  %v1790_v52 = vsub.f32 %v247_v29, %v1759_v40  ;;  %v361_v53 = vsub.f32 %v1731_v28, %v1763_v41  ;;  %p1480_p8 = pneg %p1479_p4 }
  0x3d   : > { %2297 = vst [vmem:[#allocation18_spill] sm:$0xff] %v1749_v35  ;;  %446 = vmatpush.msra.mxu2 %v1703_v19  ;;  %513 = vmatpush.msra.mxu3 %v1685_v10  ;;  %v1797_v54 = vand.u32 4294901760, %v1766_v42  ;;  %v1804_v57 = vand.u32 4294901760, %v349_v45  ;;  %v1806_v58 = vand.u32 4294901760, %v244_v49  ;;  %v1809_v59 = vsub.f32 %v246_v36, %v1774_v46 }
  0x3e   : > { %2298 = vst [vmem:[#allocation19_spill] sm:$0xff] %v1766_v42  ;;  %268 = vmatpush.msra.mxu0 %v1687_v11  ;;  %333 = vmatpush.msra.mxu1 %v1755_v38  ;;  %v1813_v60 = vand.u32 4294901760, %v355_v47  ;;  %v367_v61 = vsub.f32 %v1749_v35, %v1781_v48  ;;  %v1819_v63 = vand.u32 4294901760, %v243_v55  ;;  %v1822_v0 = vand.u32 4294901760, %v1790_v52 }
  0x3f   : > { %2299 = vst [vmem:[#allocation20_spill] sm:$0xff] %v1790_v52  ;;  %449 = vmatpush.msra.mxu2 %v1706_v20  ;;  %515 = vmatpush.msra.mxu3 %v1687_v11  ;;  %v1825_v1 = vsub.f32 %v245_v43, %v1787_v51  ;;  %v1828_v2 = vand.u32 4294901760, %v1800_v56  ;;  %v1832_v6 = vand.u32 4294901760, %v361_v53  ;;  %v373_v7 = vsub.f32 %v1766_v42, %v1797_v54 }
  0x40   : > { %270 = vmatpush.msra.mxu0 %v1700_v17  ;;  %339 = vmatpush.msra.mxu1 %v1770_v44  ;;  %2300 = vst [vmem:[#allocation21_spill] sm:$0xff] %v1809_v59  ;;  %v1838_v12 = vand.u32 4294901760, %v242_v62  ;;  %v1841_v13 = vand.u32 4294901760, %v1809_v59  ;;  %v1844_v18 = vsub.f32 %v244_v49, %v1806_v58  ;;  %v1852_v30 = vand.u32 4294901760, %v367_v61 }
  0x41   : > { %452 = vmatpush.msra.mxu2 %v1711_v22  ;;  %517 = vmatpush.msra.mxu3 %v1700_v17  ;;  %2301 = vst [vmem:[#allocation22_spill] sm:$0xff] %v1825_v1  ;;  %v1848_v29 = vsub.f32 %v1800_v56, %v1828_v2  ;;  %v379_v32 = vsub.f32 %v1790_v52, %v1822_v0  ;;  %v1861_v36 = vand.u32 4294901760, %v241_v8  ;;  %v1864_v39 = vand.u32 4294901760, %v1825_v1 }
  0x42   : > { %272 = vmatpush.msra.mxu0 %v1708_v21  ;;  %345 = vmatpush.msra.mxu1 %v1785_v50  ;;  %2302 = vst [vmem:[#allocation23_spill] sm:$0xff] %v1844_v18  ;;  %v1867_v43 = vsub.f32 %v243_v55, %v1819_v63  ;;  %v1871_v45 = vand.u32 4294901760, %v373_v7  ;;  %v385_v49 = vsub.f32 %v1809_v59, %v1841_v13  ;;  %v1879_v53 = vand.u32 4294901760, %v1844_v18 }
  0x43   : > { %455 = vmatpush.msra.mxu2 %v1731_v28  ;;  %519 = vmatpush.msra.mxu3 %v1708_v21  ;;  %v291_v47 = vand.u32 4294901760, %v1848_v29  ;;  %v1882_v55 = vsub.f32 %v242_v62, %v1838_v12  ;;  %v1885_v61 = vand.u32 4294901760, %v1855_v31  ;;  %v1891_v7 = vand.u32 4294901760, %v379_v32 }
  0x44   : > { %274 = vmatpush.msra.mxu0 %v1728_v27  ;;  %351 = vmatpush.msra.mxu1 %v1804_v57  ;;  %2303 = vst [vmem:[#allocation24_spill] sm:$0xff] %v1867_v43  ;;  %v1899_v62 = vsub.f32 %v241_v8, %v1861_v36  ;;  %v1906_v32 = vand.u32 4294901760, %v385_v49  ;;  %v397_v28 = vsub.f32 %v1844_v18, %v1879_v53 }
  0x45   : > { %458 = vmatpush.msra.mxu2 %v1749_v35  ;;  %521 = vmatpush.msra.mxu3 %v1728_v27  ;;  %v1896_v35 = vand.u32 4294901760, %v1867_v43  ;;  %v1911_v22 = vand.u32 4294901760, %v1882_v55  ;;  %v1915_v8 = vsub.f32 %v1855_v31, %v1885_v61 }
  0x46   : > { %276 = vmatpush.msra.mxu0 %v1759_v40  ;;  %357 = vmatpush.msra.mxu1 %v1813_v60  ;;  %2304 = vst [vmem:[#allocation25_spill] sm:$0xff] %v1899_v62  ;;  %v1926_v20 = vand.u32 4294901760, %v1899_v62  ;;  %v1935_v16 = vand.u32 4294901760, %v397_v28 }
  0x47   : > { %461 = vmatpush.msra.mxu2 %v1766_v42  ;;  %523 = vmatpush.msra.mxu3 %v1759_v40  ;;  %v391_v42 = vsub.f32 %v1825_v1, %v1864_v39  ;;  %v299_v15 = vand.u32 4294901760, %v1915_v8 }
  0x48   : > { %278 = vmatpush.msra.mxu0 %v1774_v46  ;;  %363 = vmatpush.msra.mxu1 %v1832_v6 }
  0x49   : > { %464 = vmatpush.msra.mxu2 %v1790_v52  ;;  %525 = vmatpush.msra.mxu3 %v1774_v46  ;;  %v292_v52 = vsub.f32 %v1848_v29, %v291_v47  ;;  %v1921_v49 = vand.u32 4294901760, %v391_v42  ;;  %v409_v42 = vsub.f32 %v1882_v55, %v1911_v22  ;;  %v300_v14 = vsub.f32 %v1915_v8, %v299_v15 }
  0x4a   : > { %280 = vmatpush.msra.mxu0 %v1787_v51  ;;  %369 = vmatpush.msra.mxu1 %v1852_v30 }
  0x4b   : > { %467 = vmatpush.msra.mxu2 %v1809_v59  ;;  %527 = vmatpush.msra.mxu3 %v1787_v51  ;;  %v403_v59 = vsub.f32 %v1867_v43, %v1896_v35  ;;  %v293_v19 = vand.u32 4294901760, %v292_v52 }
  0x4c   : > { %282 = vmatpush.msra.mxu0 %v1806_v58  ;;  %375 = vmatpush.msra.mxu1 %v1871_v45 }
  0x4d   : > { %470 = vmatpush.msra.mxu2 %v1825_v1  ;;  %529 = vmatpush.msra.mxu3 %v1806_v58  ;;  %v1931_v1 = vld [vmem:[%s1667_s7 + $0x10] sm:$0xff]  ;;  %v1944_v52 = vand.u32 4294901760, %v403_v59 }
  0x4e   : > { %284 = vmatpush.msra.mxu0 %v1819_v63  ;;  %381 = vmatpush.msra.mxu1 %v1891_v7  ;;  %v1949_v28 = vand.u32 4294901760, %v1931_v1 }
  0x4f   : > { %473 = vmatpush.msra.mxu2 %v1844_v18  ;;  %531 = vmatpush.msra.mxu3 %v1819_v63  ;;  %v415_v18 = vsub.f32 %v1899_v62, %v1926_v20 }
  0x50   : > { %286 = vmatpush.msra.mxu0 %v1838_v12  ;;  %387 = vmatpush.msra.mxu1 %v1906_v32  ;;  %v306_v59 = vsub.f32 %v1931_v1, %v1949_v28 }
  0x51   : > { %476 = vmatpush.msra.mxu2 %v1867_v43  ;;  %533 = vmatpush.msra.mxu3 %v1838_v12  ;;  %v1954_v43 = vand.u32 4294901760, %v409_v42  ;;  %v301_v42 = vand.u32 4294901760, %v300_v14 }
  0x52   : > { %288 = vmatpush.msra.mxu0 %v1861_v36  ;;  %393 = vmatpush.msra.mxu1 %v1921_v49 }
  0x53   : > { %294 = vmatmul.f32.vlgmr.msra.gmra.mxu0 %v293_v19  ;;  %479 = vmatpush.msra.mxu2 %v1882_v55  ;;  %v1961_v19 = vand.u32 4294901760, %v415_v18  ;;  %v307_v18 = vand.u32 4294901760, %v306_v59 }
  0x54   : > { %399 = vmatpush.msra.mxu1 %v1935_v16  ;;  %564 = vmatpush.msrb.mxu0 %v1716_v23 }
  0x55   : > { %482 = vmatpush.msra.mxu2 %v1899_v62  ;;  %535 = vmatpush.msra.mxu3 %v1861_v36  ;;  %v1971_v62 = vld [vmem:[%s1667_s7 + $0x18] sm:$0xff]  ;;  %s1481_s7 = scalar_lea.hbm %s2269_s4, 128 }
  0x56   : > { %405 = vmatpush.msra.mxu1 %v1944_v52  ;;  %568 = vmatpush.msrb.mxu0 %v1719_v24  ;;  %v1979_v14 = vand.u32 4294901760, %v1971_v62  ;;  %p1483_p2 = scmp.lt.s32.totalorder %s1481_s7, %s1477_s20 }
  0x57   : > { %485 = vmatmul.f32.vlgmr.msra.gmra.mxu2 %v1848_v29  ;;  %539 = vmatmul.f32.vlgmr.msra.gmra.mxu3 %v291_v47 }
  0x58   : > { %696 = vmatpush.msrb.mxu2 %v1677_v3  ;;  %411 = vmatpush.msra.mxu1 %v1954_v43  ;;  %p1484_p9 = por %p1483_p2, %p1482_p7 }
  0x59   : > { %572 = vmatpush.msrb.mxu0 %v1722_v25  ;;  %765 = vmatpush.msrb.mxu3 %v1752_v37  ;;  %v308_v37 = vsub.f32 %v306_v59, %v307_v18 }
  0x5a   : > { %698 = vmatpush.msrb.mxu2 %v1679_v4  ;;  %417 = vmatpush.msra.mxu1 %v1961_v19  ;;  %p1485_p10 = pnand %p1484_p9, %p1480_p8 }
  0x5b   : > { %576 = vmatpush.msrb.mxu0 %v1726_v26  ;;  %771 = vmatpush.msrb.mxu3 %v1755_v38  ;;  %v314_v38 = vsub.f32 %v1971_v62, %v1979_v14 }
  0x5c   : > { %302 = vmatmul.f32.gmra.mxu0 %v301_v42  ;;  %419 = vmatmul.f32.vlgmr.msra.gmra.mxu1 %v1828_v2 }
  0x5d   : > { %643 = vmatpush.msrb.mxu1 %v1677_v3  ;;  %700 = vmatpush.msrb.mxu2 %v1681_v5 }
  0x5e   : > { %580 = vmatpush.msrb.mxu0 %v1742_v33  ;;  %777 = vmatpush.msrb.mxu3 %v1770_v44  ;;  %v309_v44 = vand.u32 4294901760, %v308_v37  ;;  %v2308_v37 = vld [vmem:[#allocation14_spill] sm:$0xff] }
  0x5f   : > { %645 = vmatpush.msrb.mxu1 %v1679_v4  ;;  %702 = vmatpush.msrb.mxu2 %v1683_v9 }
  0x60   : > { %584 = vmatpush.msrb.mxu0 %v1746_v34  ;;  %783 = vmatpush.msrb.mxu3 %v1785_v50  ;;  %v315_v50 = vand.u32 4294901760, %v314_v38 }
  0x61   : > { %490 = vmatmul.f32.gmra.mxu2 %v1915_v8  ;;  %545 = vmatmul.f32.gmra.mxu3 %v299_v15  ;;  %v691_v15 = vmul.f32 %v1800_v56, %v1800_v56 }
  0x62   : > { %647 = vmatpush.msrb.mxu1 %v1681_v5  ;;  %704 = vmatpush.msrb.mxu2 %v1685_v10 }
  0x63   : > { %588 = vmatpush.msrb.mxu0 %v1763_v41  ;;  %789 = vmatpush.msrb.mxu3 %v1804_v57  ;;  %v316_v57 = vsub.f32 %v314_v38, %v315_v50 }
  0x64   : > { %649 = vmatpush.msrb.mxu1 %v1683_v9  ;;  %706 = vmatpush.msrb.mxu2 %v1687_v11 }
  0x65   : > { %592 = vmatpush.msrb.mxu0 %v1781_v48  ;;  %795 = vmatpush.msrb.mxu3 %v1813_v60  ;;  %v2011_v60 = vand.u32 4294901760, %v691_v15  ;;  %v317_v29 = vand.u32 4294901760, %v316_v57 }
  0x66   : > { %310 = vmatmul.f32.gmra.mxu0 %v309_v44  ;;  %423 = vmatmul.f32.gmra.mxu1 %v1885_v61 }
  0x67   : > { %651 = vmatpush.msrb.mxu1 %v1685_v10  ;;  %708 = vmatpush.msrb.mxu2 %v1700_v17 }
  0x68   : > { %596 = vmatpush.msrb.mxu0 %v1797_v54  ;;  %801 = vmatpush.msrb.mxu3 %v1832_v6  ;;  %v2022_v6 = vsub.f32 %v691_v15, %v2011_v60 }
  0x69   : > { %653 = vmatpush.msrb.mxu1 %v1687_v11  ;;  %710 = vmatpush.msrb.mxu2 %v1708_v21 }
  0x6a   : > { %600 = vmatpush.msrb.mxu0 %v1822_v0  ;;  %807 = vmatpush.msrb.mxu3 %v1852_v30  ;;  %v692_v30 = vmul.f32 %v1855_v31, %v1855_v31 }
  0x6b   : > { %495 = vmatmul.f32.gmra.mxu2 %v306_v59  ;;  %551 = vmatmul.f32.gmra.mxu3 %v307_v18  ;;  %v2307_v18 = vld [vmem:[#allocation13_spill] sm:$0xff] }
  0x6c   : > { %655 = vmatpush.msrb.mxu1 %v1700_v17  ;;  %712 = vmatpush.msrb.mxu2 %v1728_v27  ;;  %v2036_v47 = vand.u32 4294901760, %v692_v30 }
  0x6d   : > { %604 = vmatpush.msrb.mxu0 %v1841_v13  ;;  %813 = vmatpush.msrb.mxu3 %v1871_v45  ;;  %v729_v45 = vand.u32 4294901760, %v2022_v6 }
  0x6e   : > { %657 = vmatpush.msrb.mxu1 %v1708_v21  ;;  %714 = vmatpush.msrb.mxu2 %v1759_v40 }
  0x6f   : > { %608 = vmatpush.msrb.mxu0 %v1864_v39  ;;  %819 = vmatpush.msrb.mxu3 %v1891_v7  ;;  %v730_v7 = vsub.f32 %v2022_v6, %v729_v45 }
  0x70   : > { %318 = vmatmul.f32.gmra.mxu0 %v317_v29  ;;  %427 = vmatmul.f32.gmra.mxu1 %v1949_v28 }
  0x71   : > { %659 = vmatpush.msrb.mxu1 %v1728_v27  ;;  %716 = vmatpush.msrb.mxu2 %v1774_v46  ;;  %v731_v8 = vand.u32 4294901760, %v730_v7 }
  0x72   : > { %612 = vmatpush.msrb.mxu0 %v1879_v53  ;;  %825 = vmatpush.msrb.mxu3 %v1906_v32  ;;  %v2048_v32 = vsub.f32 %v692_v30, %v2036_v47 }
  0x73   : > { %661 = vmatpush.msrb.mxu1 %v1759_v40  ;;  %718 = vmatpush.msrb.mxu2 %v1787_v51 }
  0x74   : > { %616 = vmatpush.msrb.mxu0 %v1896_v35  ;;  %831 = vmatpush.msrb.mxu3 %v1921_v49  ;;  %v2305_v49 = vld [vmem:[#allocation11_spill] sm:$0xff]  ;;  %v737_v59 = vand.u32 4294901760, %v2048_v32 }
  0x75   : > { %500 = vmatmul.f32.gmra.mxu2 %v314_v38  ;;  %557 = vmatmul.f32.gmra.mxu3 %v315_v50  ;;  %v694_v38 = vmul.f32 %v1971_v62, %v1971_v62 }
  0x76   : > { %663 = vmatpush.msrb.mxu1 %v1774_v46  ;;  %720 = vmatpush.msrb.mxu2 %v1806_v58 }
  0x77   : > { %620 = vmatpush.msrb.mxu0 %v1911_v22  ;;  %837 = vmatpush.msrb.mxu3 %v1935_v16  ;;  %v693_v16 = vmul.f32 %v1931_v1, %v1931_v1 }
  0x78   : > { %665 = vmatpush.msrb.mxu1 %v1787_v51  ;;  %722 = vmatpush.msrb.mxu2 %v1819_v63 }
  0x79   : > { %624 = vmatpush.msrb.mxu0 %v1926_v20  ;;  %843 = vmatpush.msrb.mxu3 %v1944_v52  ;;  %v2306_v52 = vld [vmem:[#allocation12_spill] sm:$0xff]  ;;  %v2065_v42 = vand.u32 4294901760, %v693_v16 }
  0x7a   : > { %431 = vmatmul.f32.gmra.mxu1 %v1979_v14  ;;  %626 = vmatmul.f32.vlgmr.msrb.gmra.mxu0 %v1828_v2 }
  0x7b   : > { %667 = vmatpush.msrb.mxu1 %v1806_v58  ;;  %724 = vmatpush.msrb.mxu2 %v1838_v12 }
  0x7c   : > { %849 = vmatpush.msrb.mxu3 %v1954_v43  ;;  %875 = vmatpush.msra.mxu0 %v2305_v49  ;;  %v738_v43 = vsub.f32 %v2048_v32, %v737_v59 }
  0x7d   : > { %669 = vmatpush.msrb.mxu1 %v1819_v63  ;;  %726 = vmatpush.msrb.mxu2 %v1861_v36 }
  0x7e   : > { %855 = vmatpush.msrb.mxu3 %v1961_v19  ;;  %878 = vmatpush.msra.mxu0 %v2306_v52  ;;  %v2078_v19 = vsub.f32 %v693_v16, %v2065_v42 }
  0x7f   : > { %671 = vmatpush.msrb.mxu1 %v1838_v12  ;;  %732 = vmatmul.f32.vlgmr.msrb.gmra.mxu2 %v731_v8 }
  0x80   : > { %857 = vmatmul.f32.vlgmr.msrb.gmra.mxu3 %v2011_v60  ;;  %1002 = vmatpush.msra.mxu2 %v1716_v23  ;;  %v739_v23 = vand.u32 4294901760, %v738_v43  ;;  %v745_v44 = vand.u32 4294901760, %v2078_v19 }
  0x81   : > { %881 = vmatpush.msra.mxu0 %v2307_v18  ;;  %673 = vmatpush.msrb.mxu1 %v1861_v36 }
  0x82   : > { %1006 = vmatpush.msra.mxu2 %v1719_v24  ;;  %1081 = vmatpush.msra.mxu3 %v1677_v3  ;;  %v2309_v24 = vld [vmem:[#allocation15_spill] sm:$0xff] }
  0x83   : > { %884 = vmatpush.msra.mxu0 %v2308_v37  ;;  %675 = vmatmul.f32.vlgmr.msrb.gmra.mxu1 %v1828_v2  ;;  %v2310_v2 = vld [vmem:[#allocation16_spill] sm:$0xff] }
  0x84   : > { %630 = vmatmul.f32.gmra.mxu0 %v1885_v61  ;;  %943 = vmatpush.msra.mxu1 %v1677_v3  ;;  %v2094_v3 = vand.u32 4294901760, %v694_v38 }
  0x85   : > { %1010 = vmatpush.msra.mxu2 %v1722_v25  ;;  %1083 = vmatpush.msra.mxu3 %v1679_v4  ;;  %v2311_v25 = vld [vmem:[#allocation17_spill] sm:$0xff] }
  0x86   : > { %887 = vmatpush.msra.mxu0 %v2309_v24  ;;  %945 = vmatpush.msra.mxu1 %v1679_v4  ;;  %v746_v4 = vsub.f32 %v2078_v19, %v745_v44 }
  0x87   : > { %1014 = vmatpush.msra.mxu2 %v1726_v26  ;;  %1085 = vmatpush.msra.mxu3 %v1681_v5  ;;  %v2108_v26 = vsub.f32 %v694_v38, %v2094_v3 }
  0x88   : > { %890 = vmatpush.msra.mxu0 %v2310_v2  ;;  %740 = vmatmul.f32.gmra.mxu2 %v739_v23 }
  0x89   : > { %861 = vmatmul.f32.gmra.mxu3 %v2036_v47  ;;  %947 = vmatpush.msra.mxu1 %v1681_v5  ;;  %v2312_v5 = vld [vmem:[#allocation18_spill] sm:$0xff] }
  0x8a   : > { %1018 = vmatpush.msra.mxu2 %v1742_v33  ;;  %1087 = vmatpush.msra.mxu3 %v1683_v9  ;;  %v747_v33 = vand.u32 4294901760, %v746_v4 }
  0x8b   : > { %893 = vmatpush.msra.mxu0 %v2311_v25  ;;  %949 = vmatpush.msra.mxu1 %v1683_v9  ;;  %v2313_v9 = vld [vmem:[#allocation19_spill] sm:$0xff] }
  0x8c   : > { %1022 = vmatpush.msra.mxu2 %v1746_v34  ;;  %1089 = vmatpush.msra.mxu3 %v1685_v10  ;;  %v753_v34 = vand.u32 4294901760, %v2108_v26 }
  0x8d   : > { %896 = vmatpush.msra.mxu0 %v2312_v5  ;;  %679 = vmatmul.f32.gmra.mxu1 %v1885_v61  ;;  %v2314_v61 = vld [vmem:[#allocation20_spill] sm:$0xff] }
  0x8e   : > { %634 = vmatmul.f32.gmra.mxu0 %v1949_v28  ;;  %951 = vmatpush.msra.mxu1 %v1685_v10  ;;  %v754_v10 = vsub.f32 %v2108_v26, %v753_v34 }
  0x8f   : > { %1026 = vmatpush.msra.mxu2 %v1763_v41  ;;  %1091 = vmatpush.msra.mxu3 %v1687_v11  ;;  %v2316_v41 = vld [vmem:[#allocation22_spill] sm:$0xff] }
  0x90   : > { %899 = vmatpush.msra.mxu0 %v2313_v9  ;;  %953 = vmatpush.msra.mxu1 %v1687_v11  ;;  %v2315_v11 = vld [vmem:[#allocation21_spill] sm:$0xff] }
  0x91   : > { %1030 = vmatpush.msra.mxu2 %v1781_v48  ;;  %1093 = vmatpush.msra.mxu3 %v1700_v17  ;;  %v2317_v48 = vld [vmem:[#allocation23_spill] sm:$0xff] }
  0x92   : > { %902 = vmatpush.msra.mxu0 %v2314_v61  ;;  %748 = vmatmul.f32.gmra.mxu2 %v747_v33 }
  0x93   : > { %865 = vmatmul.f32.gmra.mxu3 %v2065_v42  ;;  %955 = vmatpush.msra.mxu1 %v1700_v17  ;;  %v755_v17 = vand.u32 4294901760, %v754_v10 }
  0x94   : > { %1034 = vmatpush.msra.mxu2 %v1797_v54  ;;  %1095 = vmatpush.msra.mxu3 %v1708_v21 }
  0x95   : > { %905 = vmatpush.msra.mxu0 %v2315_v11  ;;  %957 = vmatpush.msra.mxu1 %v1708_v21  ;;  %v2318_v21 = vld [vmem:[#allocation24_spill] sm:$0xff] }
  0x96   : > { %1038 = vmatpush.msra.mxu2 %v1822_v0  ;;  %1097 = vmatpush.msra.mxu3 %v1728_v27 }
  0x97   : > { %908 = vmatpush.msra.mxu0 %v2316_v41  ;;  %683 = vmatmul.f32.gmra.mxu1 %v1949_v28 }
  0x98   : > { %638 = vmatmul.f32.gmra.mxu0 %v1979_v14  ;;  %959 = vmatpush.msra.mxu1 %v1728_v27  ;;  %v2319_v27 = vld [vmem:[#allocation25_spill] sm:$0xff] }
  0x99   : > { %1042 = vmatpush.msra.mxu2 %v1841_v13  ;;  %1099 = vmatpush.msra.mxu3 %v1759_v40 }
  0x9a   : > { %911 = vmatpush.msra.mxu0 %v2317_v48  ;;  %961 = vmatpush.msra.mxu1 %v1759_v40 }
  0x9b   : > { %1046 = vmatpush.msra.mxu2 %v1864_v39  ;;  %1101 = vmatpush.msra.mxu3 %v1774_v46 }
  0x9c   : > { %914 = vmatpush.msra.mxu0 %v2318_v21  ;;  %756 = vmatmul.f32.gmra.mxu2 %v755_v17 }
  0x9d   : > { %869 = vmatmul.f32.gmra.mxu3 %v2094_v3  ;;  %963 = vmatpush.msra.mxu1 %v1774_v46 }
  0x9e   : > { %1050 = vmatpush.msra.mxu2 %v1879_v53  ;;  %1103 = vmatpush.msra.mxu3 %v1787_v51 }
  0x9f   : > { %917 = vmatpush.msra.mxu0 %v1882_v55  ;;  %965 = vmatpush.msra.mxu1 %v1787_v51 }
  0xa0   : > { %1054 = vmatpush.msra.mxu2 %v1896_v35  ;;  %1105 = vmatpush.msra.mxu3 %v1806_v58 }
  0xa1   : > { %920 = vmatpush.msra.mxu0 %v2319_v27  ;;  %687 = vmatmul.f32.gmra.mxu1 %v1979_v14 }
  0xa2   : > { %923 = vmatmul.f32.vlgmr.msra.gmra.mxu0 %v2022_v6  ;;  %967 = vmatpush.msra.mxu1 %v1806_v58 }
  0xa3   : > { %1058 = vmatpush.msra.mxu2 %v1911_v22  ;;  %1107 = vmatpush.msra.mxu3 %v1819_v63 }
  0xa4   : > { %969 = vmatpush.msra.mxu1 %v1819_v63 }
  0xa5   : > { %1062 = vmatpush.msra.mxu2 %v1926_v20  ;;  %1109 = vmatpush.msra.mxu3 %v1838_v12 }
  0xa6   : > { %971 = vmatpush.msra.mxu1 %v1838_v12  ;;  %1064 = vmatmul.f32.vlgmr.msra.gmra.mxu2 %v2011_v60 }
  0xa7   : > { %1111 = vmatpush.msra.mxu3 %v1861_v36 }
  0xa8   : > { %973 = vmatpush.msra.mxu1 %v1861_v36  ;;  %1113 = vmatmul.f32.vlgmr.msra.gmra.mxu3 %v2011_v60 }
  0xa9   : > { %977 = vmatmul.f32.vlgmr.msra.gmra.mxu1 %v729_v45 }
  0xaa   : > { %928 = vmatmul.f32.gmra.mxu0 %v2048_v32 }
  0xae   : > { %1068 = vmatmul.f32.gmra.mxu2 %v2036_v47 }
  0xb0   : > { %1117 = vmatmul.f32.gmra.mxu3 %v2036_v47 }
  0xb1   : > { %983 = vmatmul.f32.gmra.mxu1 %v737_v59 }
  0xb2   : > { %933 = vmatmul.f32.gmra.mxu0 %v2078_v19 }
  0xb6   : > { %1072 = vmatmul.f32.gmra.mxu2 %v2065_v42 }
  0xb8   : > { %1121 = vmatmul.f32.gmra.mxu3 %v2065_v42 }
  0xb9   : > { %989 = vmatmul.f32.gmra.mxu1 %v745_v44 }
  0xba   : > { %938 = vmatmul.f32.gmra.mxu0 %v2108_v26 }
  0xbe   : > { %1076 = vmatmul.f32.gmra.mxu2 %v2094_v3 }
  0xc0   : > { %1125 = vmatmul.f32.gmra.mxu3 %v2094_v3 }
  0xc1   : > { %995 = vmatmul.f32.gmra.mxu1 %v753_v34 }
  0xd0   : > { %v295_v20 = vpop.f32.mrf.mxu0 }
  0xd9   : > { %v303_v22 = vpop.f32.mrf.mxu0  ;;  %v420_v35 = vpop.f32.mrf.mxu1 }
  0xda   : > { %v486_v40 = vpop.f32.mrf.mxu2  ;;  %v540_v46 = vpop.f32.mrf.mxu3  ;;  %v421_v16 = vadd.f32 %v420_v35, %v295_v20 }
  0xdc   : > { %v487_v52 = vadd.f32 %v486_v40, %v421_v16 }
  0xde   : > { %v541_v18 = vadd.f32 %v540_v46, %v487_v52 }
  0xe3   : > { %v311_v51 = vpop.f32.mrf.mxu0  ;;  %v424_v54 = vpop.f32.mrf.mxu1 }
  0xe4   : > { %v491_v58 = vpop.f32.mrf.mxu2  ;;  %v546_v63 = vpop.f32.mrf.mxu3  ;;  %v425_v19 = vadd.f32 %v424_v54, %v303_v22 }
  0xe6   : > { %v492_v2 = vadd.f32 %v491_v58, %v425_v19 }
  0xe8   : > { %v547_v9 = vadd.f32 %v546_v63, %v492_v2 }
  0xed   : > { %v319_v0 = vpop.f32.mrf.mxu0  ;;  %v428_v12 = vpop.f32.mrf.mxu1 }
  0xee   : > { %v496_v13 = vpop.f32.mrf.mxu2  ;;  %v552_v36 = vpop.f32.mrf.mxu3  ;;  %v429_v26 = vadd.f32 %v428_v12, %v311_v51 }
  0xf0   : > { %v497_v48 = vadd.f32 %v496_v13, %v429_v26 }
  0xf2   : > { %v553_v51 = vadd.f32 %v552_v36, %v497_v48 }
  0xf7   : > { %v432_v39 = vpop.f32.mrf.mxu1  ;;  %v627_v53 = vpop.f32.mrf.mxu0 }
  0xf8   : > { %v501_v55 = vpop.f32.mrf.mxu2  ;;  %v2179_v28 = vpop.f32.mrf.mxu3  ;;  %v628_v23 = vadd.f32 %v627_v53, %v541_v18  ;;  %v433_v63 = vadd.f32 %v432_v39, %v319_v0 }
 0x100   : > { %v676_v14 = vpop.f32.mrf.mxu1 }
 0x101   : > { %v631_v50 = vpop.f32.mrf.mxu0  ;;  %v2185_v3 = vadd.f32 %v676_v14, %v628_v23 }
 0x102   : > { %v733_v15 = vpop.f32.mrf.mxu2  ;;  %v632_v11 = vadd.f32 %v631_v50, %v547_v9 }
 0x103   : > { %v858_v57 = vpop.f32.mrf.mxu3  ;;  %v1129_v34 = vmul.f32 %v2185_v3, %v2185_v3 }
 0x104   : > { %v859_v42 = vadd.f32 %v858_v57, %v733_v15 }
 0x10a   : > { %v680_v60 = vpop.f32.mrf.mxu1 }
 0x10b   : > { %v635_v29 = vpop.f32.mrf.mxu0  ;;  %v741_v6 = vpop.f32.mrf.mxu2  ;;  %v2189_v27 = vadd.f32 %v680_v60, %v632_v11  ;;  %v502_v60 = vadd.f32 %v501_v55, %v433_v63 }
 0x10c   : > { %v862_v30 = vpop.f32.mrf.mxu3  ;;  %v636_v50 = vadd.f32 %v635_v29, %v553_v51 }
 0x10d   : > { %v863_v5 = vadd.f32 %v862_v30, %v741_v6  ;;  %v1130_v12 = vmul.f32 %v2189_v27, %v2189_v27 }
 0x114   : > { %v684_v45 = vpop.f32.mrf.mxu1 }
 0x115   : > { %v2181_v47 = vpop.f32.mrf.mxu0  ;;  %v749_v7 = vpop.f32.mrf.mxu2  ;;  %v2193_v6 = vadd.f32 %v684_v45, %v636_v50 }
 0x116   : > { %v866_v32 = vpop.f32.mrf.mxu3 }
 0x117   : > { %v867_v54 = vadd.f32 %v866_v32, %v749_v7  ;;  %v1131_v29 = vmul.f32 %v2193_v6, %v2193_v6 }
 0x11e   : > { %v2183_v8 = vpop.f32.mrf.mxu1 }
 0x11f   : > { %v924_v49 = vpop.f32.mrf.mxu0  ;;  %v757_v59 = vpop.f32.mrf.mxu2 }
 0x120   : > { %v870_v43 = vpop.f32.mrf.mxu3  ;;  %v925_v37 = vadd.f32 %v924_v49, %v859_v42  ;;  %v559_v42 = vadd.f32 %v2179_v28, %v502_v60 }
 0x121   : > { %v871_v0 = vadd.f32 %v870_v43, %v757_v59 }
 0x122   : > { %v640_v45 = vadd.f32 %v2181_v47, %v559_v42 }
 0x126   : > { %v978_v38 = vpop.f32.mrf.mxu1 }
 0x127   : > { %v929_v24 = vpop.f32.mrf.mxu0  ;;  %v979_v44 = vadd.f32 %v978_v38, %v925_v37 }
 0x128   : > { %v930_v10 = vadd.f32 %v929_v24, %v863_v5 }
 0x129   : > { %v1065_v4 = vpop.f32.mrf.mxu2 }
 0x12a   : > { %v1066_v25 = vadd.f32 %v1065_v4, %v979_v44  ;;  %v2200_v44 = vadd.f32 %v2183_v8, %v640_v45  ;;  %v2205_v4 = vld [vmem:[%s2267_s2] ss:$0 sm:$0xff] }
 0x12b   : > { %v1114_v33 = vpop.f32.mrf.mxu3 }
 0x12c   : > { %v1115_v61 = vadd.f32 %v1114_v33, %v1066_v25  ;;  %v1132_v8 = vmul.f32 %v2200_v44, %v2200_v44 }
 0x12e   : > { %v1133_v41 = vsub.f32 %v1115_v61, %v1129_v34  ;;  %v984_v17 = vpop.f32.mrf.mxu1 }
 0x12f   : > { %v985_v21 = vadd.f32 %v984_v17, %v930_v10  ;;  %v934_v22 = vpop.f32.mrf.mxu0  ;;  %v1187_v10 = vsub.f32 %v1800_v56, %v2185_v3 }
 0x130   : > { %v1137_v20 = vmax.f32 %v1133_v41, 0.0  ;;  %v935_v14 = vadd.f32 %v934_v22, %v867_v54  ;;  %v1392_v41 = vld [vmem:[%s2268_s3] ss:$0 sm:$0xff] }
 0x131   : > { %v1069_v35 = vpop.f32.mrf.mxu2 }
 0x132   : > { %v1141_v40 = vadd.f32 1e-05, %v1137_v20  ;;  %v1070_v46 = vadd.f32 %v1069_v35, %v985_v21 }
 0x133   : > { %v1118_v58 = vpop.f32.mrf.mxu3 }
 0x134   : > { %1393 = vrsqrt.f32 %v1141_v40  ;;  %v1119_v53 = vadd.f32 %v1118_v58, %v1070_v46  ;;  %vm1151_vm1 = vweird.f32 %v1141_v40  ;;  %v1188_v58 = vsub.f32 %v1855_v31, %v2189_v27 }
 0x135   : > { %v1189_v31 = vsub.f32 %v1931_v1, %v2193_v6  ;;  %v1190_v6 = vsub.f32 %v1971_v62, %v2200_v44 }
 0x136   : > { %v1134_v13 = vsub.f32 %v1119_v53, %v1130_v12  ;;  %v990_v15 = vpop.f32.mrf.mxu1 }
 0x137   : > { %v991_v57 = vadd.f32 %v990_v15, %v935_v14  ;;  %v939_v7 = vpop.f32.mrf.mxu0 }
 0x138   : > { %v1138_v30 = vmax.f32 %v1134_v13, 0.0  ;;  %v940_v55 = vadd.f32 %v939_v7, %v871_v0 }
 0x139   : > { %v1073_v16 = vpop.f32.mrf.mxu2 }
 0x13a   : > { %v1394_v49 = vpop.eup %1393  ;;  %v1142_v36 = vadd.f32 1e-05, %v1138_v30  ;;  %v1074_v32 = vadd.f32 %v1073_v16, %v991_v57 }
 0x13b   : > { %v1146_v39 = vmul.f32 %v1394_v49, %v1141_v40  ;;  %v1122_v52 = vpop.f32.mrf.mxu3  ;;  %vm1152_vm0 = vweird.f32 %v1394_v49 }
 0x13c   : > { %1395 = vrsqrt.f32 %v1142_v36  ;;  %v1123_v18 = vadd.f32 %v1122_v52, %v1074_v32  ;;  %vm1153_vm2 = vmor %vm1151_vm1, %vm1152_vm0  ;;  %vm1161_vm4 = vweird.f32 %v1142_v36 }
 0x13d   : > { %v1147_v19 = vmul.f32 %v1394_v49, %v1146_v39 }
 0x13e   : > { %v1135_v37 = vsub.f32 %v1123_v18, %v1131_v29  ;;  %v996_v23 = vpop.f32.mrf.mxu1 }
 0x13f   : > { %v1148_v38 = vmul.f32 0.5, %v1147_v19  ;;  %v997_v24 = vadd.f32 %v996_v23, %v940_v55 }
 0x140   : > { %v1139_v59 = vmax.f32 %v1135_v37, 0.0 }
 0x141   : > { %v1149_v43 = vsub.f32 1.5, %v1148_v38  ;;  %v1077_v28 = vpop.f32.mrf.mxu2 }
 0x142   : > { %v1396_v2 = vpop.eup %1395  ;;  %v1143_v25 = vadd.f32 1e-05, %v1139_v59  ;;  %v1078_v26 = vadd.f32 %v1077_v28, %v997_v24 }
 0x143   : > { %v1150_v47 = vmul.f32 %v1394_v49, %v1149_v43  ;;  %v1156_v5 = vmul.f32 %v1396_v2, %v1142_v36  ;;  %v1126_v33 = vpop.f32.mrf.mxu3  ;;  %vm1162_vm3 = vweird.f32 %v1396_v2 }
 0x144   : > { %1397 = vrsqrt.f32 %v1143_v25  ;;  %v1127_v9 = vadd.f32 %v1126_v33, %v1078_v26  ;;  %vm1163_vm5 = vmor %vm1161_vm4, %vm1162_vm3  ;;  %vm1171_vm7 = vweird.f32 %v1143_v25 }
 0x145   : > { %v1154_v34 = vsel %vm1153_vm2, %v1394_v49, %v1150_v47  ;;  %v1157_v61 = vmul.f32 %v1396_v2, %v1156_v5 }
 0x146   : > { %v1194_v11 = vmul.f32 %v2205_v4, %v1154_v34  ;;  %v1136_v17 = vsub.f32 %v1127_v9, %v1132_v8 }
 0x147   : > { %v1158_v48 = vmul.f32 0.5, %v1157_v61 }
 0x148   : > { %v1198_v21 = vmul.f32 %v1194_v11, %v1187_v10  ;;  %v1140_v20 = vmax.f32 %v1136_v17, 0.0 }
 0x149   : > { %v1159_v22 = vsub.f32 1.5, %v1158_v48 }
 0x14a   : > { %v1398_v35 = vpop.eup %1397  ;;  %v1205_v40 = vadd.f32 %v1392_v41, %v1198_v21  ;;  %v1144_v46 = vadd.f32 1e-05, %v1140_v20 }
 0x14b   : > { %v1160_v51 = vmul.f32 %v1396_v2, %v1159_v22  ;;  %v1166_v54 = vmul.f32 %v1398_v35, %v1143_v25  ;;  %vm1172_vm6 = vweird.f32 %v1398_v35 }
 0x14c   : > { %1209 = vst [vmem:[%s2217_s23] sm:$0xff] %v1205_v40  ;;  %1399 = vrsqrt.f32 %v1144_v46  ;;  %vm1173_vm8 = vmor %vm1171_vm7, %vm1172_vm6  ;;  %vm1181_vm10 = vweird.f32 %v1144_v46 }
 0x14d   : > { %v1164_v56 = vsel %vm1163_vm5, %v1396_v2, %v1160_v51  ;;  %v1167_v3 = vmul.f32 %v1398_v35, %v1166_v54 }
 0x14e   : > { %v1195_v63 = vmul.f32 %v2205_v4, %v1164_v56 }
 0x14f   : > { %v1168_v12 = vmul.f32 0.5, %v1167_v3 }
 0x150   : > { %v1199_v53 = vmul.f32 %v1195_v63, %v1188_v58 }
 0x151   : > { %v1169_v14 = vsub.f32 1.5, %v1168_v12 }
 0x152   : > { %v1400_v50 = vpop.eup %1399  ;;  %v1206_v13 = vadd.f32 %v1392_v41, %v1199_v53 }
 0x153   : > { %v1170_v15 = vmul.f32 %v1398_v35, %v1169_v14  ;;  %v1176_v57 = vmul.f32 %v1400_v50, %v1144_v46  ;;  %vm1182_vm9 = vweird.f32 %v1400_v50 }
 0x154   : > { %1210 = vst [vmem:[%s2217_s23 + $0x8] sm:$0xff] %v1206_v13  ;;  %vm1183_vm11 = vmor %vm1181_vm10, %vm1182_vm9 }
 0x155   : > { %v1174_v60 = vsel %vm1173_vm8, %v1398_v35, %v1170_v15  ;;  %v1177_v30 = vmul.f32 %v1400_v50, %v1176_v57 }
 0x156   : > { %v1196_v27 = vmul.f32 %v2205_v4, %v1174_v60 }
 0x157   : > { %v1178_v16 = vmul.f32 0.5, %v1177_v30 }
 0x158   : > { %v1200_v49 = vmul.f32 %v1196_v27, %v1189_v31 }
 0x159   : > { %v1179_v36 = vsub.f32 1.5, %v1178_v16 }
 0x15a   : > { %v1207_v7 = vadd.f32 %v1392_v41, %v1200_v49 }
 0x15b   : > { %v1180_v32 = vmul.f32 %v1400_v50, %v1179_v36 }
 0x15c   : > { %1211 = vst [vmem:[%s2217_s23 + $0x10] sm:$0xff] %v1207_v7 }
 0x15d   : > { %v1184_v1 = vsel %vm1183_vm11, %v1400_v50, %v1180_v32 }
 0x15e   : > { %v1197_v0 = vmul.f32 %v2205_v4, %v1184_v1 }
 0x160   : > { %v1201_v39 = vmul.f32 %v1197_v0, %v1190_v6 }
 0x162   : > { %v1208_v52 = vadd.f32 %v1392_v41, %v1201_v39 }
 0x164   : > { %1212 = vst [vmem:[%s2217_s23 + $0x18] sm:$0xff] %v1208_v52 }
 0x165   : > { %1488 = shalt.err (!%p1485_p10)
}
 0x166   : > { %s1536_s10 = smov 128   ;;  %s1537_s30 = smov 8  }
 0x167   : > { %1336 = dma.vmem_to_hbm [thread:$0]  (%p1631_p0), %s1227_s19, 512, %s1229_s13, %s1214_s12, %s1536_s10, %s1536_s10, %s1537_s30  }
 0x168 PF: > { %p1353_p11 = scmp.ge.s32.totalorder %s1531_s18, 2  ;;  %s1243_s5 = sand.u32 1, %s1519_s15  }
 0x169   : > { %s1244_s23 = scalar_lea.sflag [#allocation4], %s1243_s5 }
 0x16a   : > { %p1347_p12 = pnand %p1353_p11, %p1598_p6 }
 0x16c   : > { %p1348_p13 = pneg %p1347_p12 }
 0x16e   : > { %1514 = dma.done.wait (%p1348_p13), %s1244_s23, 512  }
 0x16f   : > { %1516 = vsyncadd (%p1348_p13), %s1244_s23, 4294966784  ;;  %p18_p3 = scmp.ge.s32.totalorder %s1615_s29, 6   ;;  %s2320_s15 = smov %s1523_s16 }
 0x170   : > { %s2321_s16 = smov %s1527_s17  ;;  %s2322_s17 = smov %s1627_s8 }
 0x171   : > { %s2323_s18 = smov %s1615_s29  ;;  %20 = sbr.rel (!%p18_p3) target bundleno = 6 (0x6), region = 85 }
 0x176   :  { %1250 = vsyncpa [#allocation3], 1 }
 0x177   :  { %1252 = vsyncpa [#allocation3 + $0x1], 1 }
 0x178   :  { %1253 = vsyncpa [#allocation6], 1 }
 0x179   :  { %1254 = vsyncpa [#allocation4], 1 }
 0x17a   :  { %1256 = vsyncpa [#allocation4 + $0x1], 1 }

</bundles_post_ra>
